<compile_context>
chip_gen: v5e
topology: v5e:2x2
jax: 0.10.0
libtpu: 0.0.40
codegen_flags: <defaults>
</compile_context>

<pallas_src>
import functools

import jax
import jax.numpy as jnp
from jax.experimental import pallas as pl
from jax.experimental.pallas import tpu as pltpu

LANES = 128
MAX_TILE_ROWS = 2048        # (2048, 128) f32 = 1 MiB per input buffer


def _round_up(x, m):
    return (x + m - 1) // m * m


def _uabce_kernel(sm_ref, sv_ref, tg_ref, out_ref, *,
                  n_valid, tile_rows, last_blk, apply_mask):
    """Elementwise UABCE loss + (8,128) vreg running-sum per core."""
    c = pl.program_id(0)               # parallel (core) axis
    b = pl.program_id(1)               # arbitrary (reduction) axis
    nb_inner = pl.num_programs(1)

    @pl.when(b == 0)
    def _():
        out_ref[...] = jnp.zeros_like(out_ref)

    s = sm_ref[...].astype(jnp.float32)
    v = sv_ref[...].astype(jnp.float32)
    t = tg_ref[...].astype(jnp.float32)

    # Stable formulation (equivalent to the PyTorch formula in finite range):
    #   -log(sigmoid(s))            = max(-s, 0) + log(1 + exp(-|s|))
    #   sigmoid(s)*(1 - sigmoid(s)) = e / (1 + e)^2 ,  e = exp(-|s|)
    e = jnp.exp(-jnp.abs(s))                       # EUP
    inv = 1.0 / (1.0 + e)
    neg_log_sig = jnp.maximum(-s, 0.0) + jnp.log(1.0 + e)
    loss = (1.0 - t) * s + neg_log_sig + 0.5 * (e * inv * inv) * v

    def _accum(x):
        # (tile_rows, 128) -> vreg-wise partial sums into one (8, 128) block.
        out_ref[...] += x.reshape(-1, 8, LANES).sum(axis=0)

    if not apply_mask:
        # Every element covered by the grid is valid (static fact).
        _accum(loss)
    else:
        blk = c * nb_inner + b
        is_last = blk == last_blk

        @pl.when(jnp.logical_not(is_last))
        def _():
            _accum(loss)

        @pl.when(is_last)
        def _():
            # Mask the padded / out-of-bounds tail of the final block.
            row0 = blk * tile_rows
            ridx = jax.lax.broadcasted_iota(jnp.int32, loss.shape, 0) + row0
            lidx = jax.lax.broadcasted_iota(jnp.int32, loss.shape, 1)
            flat = ridx * LANES + lidx
            _accum(jnp.where(flat < n_valid, loss, 0.0))


@functools.partial(jax.jit, static_argnames=("reduction",))
def uabce_loss(score_mean, score_var, target, reduction="mean"):
    if reduction not in ("mean", "sum"):
        raise ValueError(f"UABCELoss: invalid reduction method: {reduction}")

    n = score_mean.size
    n_lane_pad = _round_up(n, LANES)

    def _prep(x):
        x = jnp.ravel(x)                       # free for contiguous inputs
        if n_lane_pad != n:
            # Only a lane-pad when n % 128 != 0 (ragged rows are handled by
            # the partial last block + in-kernel mask, no row padding).
            x = jnp.pad(x, (0, n_lane_pad - n))
        return x.reshape(n_lane_pad // LANES, LANES)

    sm = _prep(score_mean)
    sv = _prep(score_var)
    tg = _prep(target)

    rows = n_lane_pad // LANES
    tile_rows = min(MAX_TILE_ROWS, _round_up(rows, 8))
    nb = pl.cdiv(rows, tile_rows)              # total blocks
    nc = 2 if (nb % 2 == 0 and nb >= 2) else 1  # expose both TCs on v7x
    b_inner = nb // nc

    # Does any block contain padded lanes / out-of-bounds rows?
    apply_mask = (n != nb * tile_rows * LANES)

    kernel = functools.partial(
        _uabce_kernel,
        n_valid=n, tile_rows=tile_rows, last_blk=nb - 1, apply_mask=apply_mask)

    in_spec = pl.BlockSpec((tile_rows, LANES),
                           lambda c, b: (c * b_inner + b, 0))

    partials = pl.pallas_call(
        kernel,
        out_shape=jax.ShapeDtypeStruct((nc * 8, LANES), jnp.float32),
        grid_spec=pltpu.PrefetchScalarGridSpec(
            num_scalar_prefetch=0,
            grid=(nc, b_inner),
            in_specs=[in_spec, in_spec, in_spec],
            out_specs=pl.BlockSpec((8, LANES), lambda c, b: (c, 0)),
        ),
        compiler_params=pltpu.CompilerParams(
            dimension_semantics=("parallel", "arbitrary")),
    )(sm, sv, tg)

    total = jnp.sum(partials)        # tiny (nc*8*128) reduce in the wrapper
    if reduction == "mean":
        return total / jnp.float32(n)
    return total


def _reference(score_mean, score_var, target, reduction="mean"):
    s = score_mean.astype(jnp.float32)
    v = score_var.astype(jnp.float32)
    t = target.astype(jnp.float32)
    sig = jax.nn.sigmoid(s)
    loss = (1.0 - t) * s - jnp.log(sig) + 0.5 * sig * (1.0 - sig) * v
    return loss.mean() if reduction == "mean" else loss.sum()


if __name__ == "__main__":
    key = jax.random.PRNGKey(0)
    k1, k2, k3 = jax.random.split(key, 3)

    shape = (2, 4, 16, 16)   # e.g. NCHW score maps
    score_mean = jax.random.normal(k1, shape, dtype=jnp.float32)
    score_var = jax.nn.softplus(jax.random.normal(k2, shape, dtype=jnp.float32))
    target = (jax.random.uniform(k3, shape) > 0.5).astype(jnp.float32)

    for red in ("mean", "sum"):
        out = jax.block_until_ready(uabce_loss(score_mean, score_var, target,
                                               reduction=red))
        ref = _reference(score_mean, score_var, target, reduction=red)
        assert jnp.allclose(out, ref, rtol=1e-5, atol=1e-5), (red, out, ref)

    # Ragged shape (n % 128 != 0) to exercise the in-kernel tail mask.
    rshape = (3, 5, 7)
    r1, r2, r3 = jax.random.split(jax.random.PRNGKey(1), 3)
    rm = jax.random.normal(r1, rshape, dtype=jnp.float32)
    rv = jax.nn.softplus(jax.random.normal(r2, rshape, dtype=jnp.float32))
    rt = (jax.random.uniform(r3, rshape) > 0.5).astype(jnp.float32)
    out = jax.block_until_ready(uabce_loss(rm, rv, rt, reduction="mean"))
    ref = _reference(rm, rv, rt, reduction="mean")
    assert jnp.allclose(out, ref, rtol=1e-5, atol=1e-5), ("ragged", out, ref)

    print("KERNEL_OK")
</pallas_src>

<mosaic_0001>
module attributes {stable_mosaic.version = 11 : i64} {
  func.func @_uabce_kernel(%arg0: i32, %arg1: i32, %arg2: memref<16x128xf32, #tpu.memory_space<vmem>>, %arg3: memref<16x128xf32, #tpu.memory_space<vmem>>, %arg4: memref<16x128xf32, #tpu.memory_space<vmem>>, %arg5: memref<8x128xf32, #tpu.memory_space<vmem>>) attributes {dimension_semantics = [#tpu.dimension_semantics<parallel>, #tpu.dimension_semantics<arbitrary>], iteration_bounds = array<i64: 1, 1>, scalar_prefetch = 0 : i64, scratch_operands = 0 : i64, tpu.core_type = #tpu.core_type<tc>, window_params = [{transform_indices = @transform_0, window_bounds = array<i64: 16, 128>}, {transform_indices = @transform_1, window_bounds = array<i64: 16, 128>}, {transform_indices = @transform_2, window_bounds = array<i64: 16, 128>}, {transform_indices = @transform_3, window_bounds = array<i64: 8, 128>}]} {
    %c0_i32 = arith.constant 0 : i32
    %0 = arith.cmpi eq, %arg1, %c0_i32 : i32
    %1 = arith.extui %0 : i1 to i32
    %c0_i32_0 = arith.constant 0 : i32
    %2 = arith.cmpi ne, %1, %c0_i32_0 : i32
    scf.if %2 {
      %cst_18 = arith.constant 0.000000e+00 : f32
      %37 = vector.broadcast %cst_18 : f32 to vector<8x128xf32>
      %c0_19 = arith.constant 0 : index
      %c0_20 = arith.constant 0 : index
      %38 = vector.load %arg5[%c0_19, %c0_20] : memref<8x128xf32, #tpu.memory_space<vmem>>, vector<8x128xf32>
      tpu.vector_store %arg5[%c0_19, %c0_20], %37 {strides = array<i32>} : memref<8x128xf32, #tpu.memory_space<vmem>>, vector<8x128xf32>,
    } else {
    }
    %c0 = arith.constant 0 : index
    %c0_1 = arith.constant 0 : index
    %3 = vector.load %arg2[%c0, %c0_1] : memref<16x128xf32, #tpu.memory_space<vmem>>, vector<16x128xf32>
    %c0_2 = arith.constant 0 : index
    %c0_3 = arith.constant 0 : index
    %4 = vector.load %arg3[%c0_2, %c0_3] : memref<16x128xf32, #tpu.memory_space<vmem>>, vector<16x128xf32>
    %c0_4 = arith.constant 0 : index
    %c0_5 = arith.constant 0 : index
    %5 = vector.load %arg4[%c0_4, %c0_5] : memref<16x128xf32, #tpu.memory_space<vmem>>, vector<16x128xf32>
    %6 = math.absf %3 : vector<16x128xf32>
    %cst = arith.constant 0.000000e+00 : f32
    %7 = vector.broadcast %cst : f32 to vector<16x128xf32>
    %8 = arith.subf %7, %6 : vector<16x128xf32>
    %9 = math.exp %8 : vector<16x128xf32>
    %cst_6 = arith.constant 1.000000e+00 : f32
    %10 = vector.broadcast %cst_6 : f32 to vector<16x128xf32>
    %11 = arith.addf %10, %9 : vector<16x128xf32>
    %cst_7 = arith.constant 1.000000e+00 : f32
    %12 = vector.broadcast %cst_7 : f32 to vector<16x128xf32>
    %13 = arith.divf %12, %11 : vector<16x128xf32>
    %cst_8 = arith.constant 0.000000e+00 : f32
    %14 = vector.broadcast %cst_8 : f32 to vector<16x128xf32>
    %15 = arith.subf %14, %3 : vector<16x128xf32>
    %cst_9 = arith.constant 0.000000e+00 : f32
    %16 = vector.broadcast %cst_9 : f32 to vector<16x128xf32>
    %17 = arith.maximumf %15, %16 : vector<16x128xf32>
    %cst_10 = arith.constant 1.000000e+00 : f32
    %18 = vector.broadcast %cst_10 : f32 to vector<16x128xf32>
    %19 = arith.addf %18, %9 : vector<16x128xf32>
    %20 = math.log %19 : vector<16x128xf32>
    %21 = arith.addf %17, %20 : vector<16x128xf32>
    %cst_11 = arith.constant 1.000000e+00 : f32
    %22 = vector.broadcast %cst_11 : f32 to vector<16x128xf32>
    %23 = arith.subf %22, %5 : vector<16x128xf32>
    %24 = arith.mulf %23, %3 : vector<16x128xf32>
    %25 = arith.addf %24, %21 : vector<16x128xf32>
    %26 = arith.mulf %9, %13 : vector<16x128xf32>
    %27 = arith.mulf %26, %13 : vector<16x128xf32>
    %cst_12 = arith.constant 5.000000e-01 : f32
    %28 = vector.broadcast %cst_12 : f32 to vector<16x128xf32>
    %29 = arith.mulf %28, %27 : vector<16x128xf32>
    %30 = arith.mulf %29, %4 : vector<16x128xf32>
    %31 = arith.addf %25, %30 : vector<16x128xf32>
    %c0_13 = arith.constant 0 : index
    %c0_14 = arith.constant 0 : index
    %32 = vector.load %arg5[%c0_13, %c0_14] : memref<8x128xf32, #tpu.memory_space<vmem>>, vector<8x128xf32>
    %33 = vector.shape_cast %31 : vector<16x128xf32> to vector<2x8x128xf32>
    %cst_15 = arith.constant dense<0.000000e+00> : vector<8x128xf32>
    %34 = vector.multi_reduction <add>, %33, %cst_15 [0] : vector<2x8x128xf32> to vector<8x128xf32>
    %35 = arith.addf %32, %34 : vector<8x128xf32>
    %c0_16 = arith.constant 0 : index
    %c0_17 = arith.constant 0 : index
    %36 = vector.load %arg5[%c0_16, %c0_17] : memref<8x128xf32, #tpu.memory_space<vmem>>, vector<8x128xf32>
    tpu.vector_store %arg5[%c0_16, %c0_17], %35 {strides = array<i32>} : memref<8x128xf32, #tpu.memory_space<vmem>>, vector<8x128xf32>,
    return
  }
  func.func @transform_0(%arg0: i32, %arg1: i32) -> (i32, i32) {
    %c1_i32 = arith.constant 1 : i32
    %0 = arith.muli %arg0, %c1_i32 : i32
    %1 = arith.addi %0, %arg1 : i32
    %c0_i32 = arith.constant 0 : i32
    %c0_i32_0 = arith.constant 0 : i32
    return %1, %c0_i32 : i32, i32
  }
  func.func @transform_1(%arg0: i32, %arg1: i32) -> (i32, i32) {
    %c1_i32 = arith.constant 1 : i32
    %0 = arith.muli %arg0, %c1_i32 : i32
    %1 = arith.addi %0, %arg1 : i32
    %c0_i32 = arith.constant 0 : i32
    %c0_i32_0 = arith.constant 0 : i32
    return %1, %c0_i32 : i32, i32
  }
  func.func @transform_2(%arg0: i32, %arg1: i32) -> (i32, i32) {
    %c1_i32 = arith.constant 1 : i32
    %0 = arith.muli %arg0, %c1_i32 : i32
    %1 = arith.addi %0, %arg1 : i32
    %c0_i32 = arith.constant 0 : i32
    %c0_i32_0 = arith.constant 0 : i32
    return %1, %c0_i32 : i32, i32
  }
  func.func @transform_3(%arg0: i32, %arg1: i32) -> (i32, i32) {
    %c0_i32 = arith.constant 0 : i32
    %c0_i32_0 = arith.constant 0 : i32
    return %arg0, %c0_i32 : i32, i32
  }
}

</mosaic_0001>

<bundles_post_ra>
// kernel: uabce_loss.1
= control target key start
LH: loop header
LB: loop body
LE: loop exit
PB: predicated region body
PF: predicated region fallthrough
CT: control target
= control target key end

     0   :  { %s249_s0 = inlined_call_operand.vmem [shape: f32[16,128], index: 0, kind: input, shape index: {}]   ;;  %s250_s2 = inlined_call_operand.vmem [shape: f32[16,128], index: 2, kind: input, shape index: {}]   ;;  %s251_s1 = inlined_call_operand.vmem [shape: f32[16,128], index: 1, kind: input, shape index: {}]   ;;  %s252_s3 = inlined_call_operand.vmem [shape: f32[8,128], index: 3, kind: output, shape index: {}]  }
   0x1   :  { %v85_v0 = vld [vmem:[%s249_s0] sm:$0xff]  ;;  %v222_v1 = vld [vmem:[%s249_s0 + $0x8] sm:$0xff] }
   0x2   :  { %v91_v2 = vand.u32 2147483647, %v85_v0  ;;  %v92_v3 = vand.u32 2147483647, %v222_v1  ;;  %v131_v15 = vsub.f32 0.0, %v85_v0  ;;  %v89_v16 = vld [vmem:[%s250_s2] sm:$0xff] }
   0x3   :  { %v132_v19 = vsub.f32 0.0, %v222_v1  ;;  %v90_v20 = vld [vmem:[%s250_s2 + $0x8] sm:$0xff]  ;;  %v141_v29 = vsub.f32 1.0, %v89_v16  ;;  %v87_v52 = vld [vmem:[%s251_s1] sm:$0xff] }
   0x4   :  { %v93_v4 = vsub.f32 0.0, %v91_v2  ;;  %v94_v5 = vsub.f32 0.0, %v92_v3  ;;  %v133_v33 = vmax.f32 %v131_v15, 0.0  ;;  %v142_v34 = vsub.f32 1.0, %v90_v20  ;;  %v88_v54 = vld [vmem:[%s251_s1 + $0x8] sm:$0xff] }
   0x5   :  { %v134_v39 = vmax.f32 %v132_v19, 0.0  ;;  %v143_v46 = vmul.f32 %v141_v29, %v85_v0 }
   0x6   :  { %v95_v6 = vmul.f32 1.442695, %v93_v4  ;;  %v97_v7 = vmul.f32 1.442695, %v94_v5  ;;  %v144_v49 = vmul.f32 %v142_v34, %v222_v1 }
   0x8   :  { %184 = vpow2.f32 %v95_v6 }
   0x9   :  { %186 = vpow2.f32 %v97_v7 }
   0xe   :  { %v185_v8 = vpop.eup %184 }
   0xf   :  { %v187_v9 = vpop.eup %186  ;;  %v99_v10 = vadd.f32 1.0, %v185_v8 }
  0x10   :  { %v100_v11 = vadd.f32 1.0, %v187_v9 }
  0x11   :  { %188 = vrcp.f32 %v99_v10  ;;  %vm106_vm0 = vweird.f32 %v99_v10  ;;  %v112_v17 = vand.u32 2147483648, %v99_v10  ;;  %v110_v22 = vand.u32 2147483647, %v99_v10 }
  0x12   :  { %190 = vrcp.f32 %v100_v11  ;;  %v127_v23 = vand.u32 2147483648, %v100_v11  ;;  %vm121_vm2 = vweird.f32 %v100_v11  ;;  %v125_v26 = vand.u32 2147483647, %v100_v11 }
  0x13   :  { %192 = vlog2.f32 %v99_v10  ;;  %v113_v31 = vor.u32 1.1754944e-38, %v112_v17  ;;  %vm111_vm5 = vcmp.eq.f32.partialorder %v110_v22, 8.507059e+37 }
  0x14   :  { %194 = vlog2.f32 %v100_v11  ;;  %v128_v36 = vor.u32 1.1754944e-38, %v127_v23  ;;  %vm126_vm7 = vcmp.eq.f32.partialorder %v125_v26, 8.507059e+37 }
  0x17   :  { %v189_v12 = vpop.eup %188 }
  0x18   :  { %v191_v13 = vpop.eup %190  ;;  %v102_v14 = vmul.f32 %v189_v12, %v99_v10  ;;  %vm107_vm1 = vweird.f32 %v189_v12 }
  0x19   :  { %v117_v18 = vmul.f32 %v191_v13, %v100_v11  ;;  %v193_v24 = vpop.eup %192  ;;  %vm122_vm3 = vweird.f32 %v191_v13  ;;  %vm233_vm4 = vmor %vm106_vm0, %vm107_vm1 }
  0x1a   :  { %v103_v21 = vsub.f32 1.0, %v102_v14  ;;  %v195_v27 = vpop.eup %194  ;;  %vm123_vm6 = vmor %vm121_vm2, %vm122_vm3  ;;  %v136_v37 = vmul.f32 0.6931472, %v193_v24 }
  0x1b   :  { %v118_v25 = vsub.f32 1.0, %v117_v18  ;;  %v138_v40 = vmul.f32 0.6931472, %v195_v27 }
  0x1c   :  { %v104_v28 = vmul.f32 %v189_v12, %v103_v21  ;;  %v139_v45 = vadd.f32 %v136_v37, %v133_v33 }
  0x1d   :  { %v119_v32 = vmul.f32 %v191_v13, %v118_v25  ;;  %v140_v48 = vadd.f32 %v138_v40, %v134_v39 }
  0x1e   :  { %v105_v35 = vadd.f32 %v189_v12, %v104_v28  ;;  %v145_v55 = vadd.f32 %v143_v46, %v139_v45 }
  0x1f   :  { %v120_v38 = vadd.f32 %v191_v13, %v119_v32  ;;  %v146_v57 = vadd.f32 %v144_v49, %v140_v48 }
  0x20   :  { %v109_v41 = vsel %vm233_vm4, %v189_v12, %v105_v35 }
  0x21   :  { %v114_v42 = vsel %vm111_vm5, %v113_v31, %v109_v41  ;;  %v124_v43 = vsel %vm123_vm6, %v191_v13, %v120_v38 }
  0x22   :  { %v129_v44 = vsel %vm126_vm7, %v128_v36, %v124_v43  ;;  %v147_v47 = vmul.f32 %v185_v8, %v114_v42 }
  0x23   :  { %v148_v50 = vmul.f32 %v187_v9, %v129_v44 }
  0x24   :  { %v149_v51 = vmul.f32 %v147_v47, %v114_v42 }
  0x25   :  { %v150_v53 = vmul.f32 %v148_v50, %v129_v44 }
  0x26   :  { %v151_v56 = vmul.f32 0.5, %v149_v51 }
  0x27   :  { %v152_v58 = vmul.f32 0.5, %v150_v53 }
  0x28   :  { %v153_v59 = vmul.f32 %v151_v56, %v87_v52 }
  0x29   :  { %v154_v60 = vmul.f32 %v152_v58, %v88_v54 }
  0x2a   :  { %v155_v61 = vadd.f32 %v153_v59, %v145_v55 }
  0x2b   :  { %v156_v62 = vadd.f32 %v154_v60, %v146_v57 }
  0x2d   :  { %v158_v63 = vadd.f32 %v156_v62, %v155_v61 }
  0x2f   :  { %160 = vst [vmem:[%s252_s3] sm:$0xff] %v158_v63 }

</bundles_post_ra>
